<compile_context>
chip_gen: v6e
topology: v6e:2x2x1
jax: 0.10.0
libtpu: 0.0.40
codegen_flags: <defaults>
</compile_context>

<pallas_src>
import math

import jax
import jax.numpy as jnp
from jax.experimental import pallas as pl
from jax.experimental.pallas import tpu as pltpu


def res_block_kernel(x_ref, m1_ref, b1_ref, m2_ref, b2_ref, o_ref):
    """Fused res-block over the whole batch-in-lanes activation slab.

    x_ref:  (H, NWC)        lane-dense input slab (lane = n*W*C + w*C + c)
    m*_ref: (3*NWC, NWC)    dy-stacked, batch-block-diagonal band matrices
                            (reflect padding along W folded in)
    b*_ref: (1, NWC)        lane-dense bias rows
    o_ref:  (H, NWC)        lane-dense output slab
    """
    H = x_ref.shape[0]
    x = x_ref[...].astype(jnp.float32)                       # (H, NWC)
    row = jax.lax.broadcasted_iota(jnp.int32, x.shape, 0)    # sublane index

    def conv3x3(z, m_ref, b_ref):
        # H-direction reflect pad via sublane rolls (XLU) + one-row `where`
        # halo fixups (VPU) -- no VMEM scratch round trip, no unaligned slices.
        z_up = pltpu.roll(z, H - 1, axis=0)        # row i -> z[i+1]  (shift -1)
        z_dn = pltpu.roll(z, 1, axis=0)            # row i -> z[i-1]  (shift +1)
        z_dy0 = jnp.where(row == 0, z_up, z_dn)        # padded[h]  : top halo = z[1]
        z_dy2 = jnp.where(row == H - 1, z_dn, z_up)    # padded[h+2]: bot halo = z[H-2]
        # Single MXU matmul per conv: the three dy taps are stacked along K.
        zcat = jnp.concatenate([z_dy0, z, z_dy2], axis=-1)   # (H, 3*NWC)
        acc = jnp.dot(zcat, m_ref[...], preferred_element_type=jnp.float32)
        return acc + b_ref[...]                               # lane-dense bias row

    y = conv3x3(x, m1_ref, b1_ref)
    y = jnp.maximum(y, 0.2 * y)                               # LeakyReLU(0.2)
    out = x + conv3x3(y, m2_ref, b2_ref)                      # conv2 + skip
    o_ref[...] = out.astype(o_ref.dtype)


def _stacked_band_matrix(w, W, N):
    """w: (Cout, Cin, 3, 3) PyTorch layout -> (3*N*W*Cin, N*W*Cout) f32.

    Per dy:   M[dy][v*Cin + ci, wo*Cout + co]
                 = sum_dx [v == reflect_W(wo + dx - 1)] * w[co, ci, dy, dx]
    Batch:    block-diagonal over N (lane = n*W*C + w*C + c; images don't mix).
    Stacking: the three dy blocks are concatenated along K so that
                 out = concat([z_dy0, z_dy1, z_dy2], -1) @ M_stacked.
    """
    Cout, Cin = w.shape[0], w.shape[1]
    cols = jnp.arange(W)
    rows = jnp.arange(W)
    eye_n = jnp.eye(N, dtype=jnp.float32)
    mats = []
    for dy in range(3):
        acc = jnp.zeros((W * Cin, W * Cout), jnp.float32)
        for dx in range(3):
            u = cols + (dx - 1)
            u = jnp.where(u < 0, -u, u)                       # reflect left edge
            u = jnp.where(u > W - 1, 2 * (W - 1) - u, u)      # reflect right edge
            sel = (rows[:, None] == u[None, :]).astype(jnp.float32)   # (Win, Wout)
            mix = w[:, :, dy, dx].T.astype(jnp.float32)               # (Cin, Cout)
            acc = acc + jnp.kron(sel, mix)
        mats.append(jnp.kron(eye_n, acc))                     # (N*W*Cin, N*W*Cout)
    return jnp.concatenate(mats, axis=0)                      # (3*NWC, NWC)


def res_block_forward(x_nchw, w1, b1, w2, b2):
    """x_nchw: (N, C, H, W); w*: (C, C, 3, 3) PyTorch layout; b*: (C,)."""
    N, C, H, W = x_nchw.shape
    assert H >= 2 and W >= 2, "reflect padding assumes H >= 2 and W >= 2"
    NWC = N * W * C

    # Batch-in-lanes slab: (H, N*W*C), lane index = n*W*C + w*C + c.
    x_flat = jnp.transpose(x_nchw, (2, 0, 3, 1)).reshape(H, NWC)

    m1 = _stacked_band_matrix(w1, W, N)                       # (3*NWC, NWC)
    m2 = _stacked_band_matrix(w2, W, N)
    b1_row = jnp.tile(b1, N * W).reshape(1, NWC)
    b2_row = jnp.tile(b2, N * W).reshape(1, NWC)

    flops = 2 * (2 * H * (3 * NWC) * NWC)                     # 2 convs, 1 matmul each
    bytes_accessed = 4 * (2 * x_flat.size + m1.size + m2.size
                          + b1_row.size + b2_row.size)

    vmem_spec = pl.BlockSpec(memory_space=pltpu.MemorySpace.VMEM)
    out_flat = pl.pallas_call(
        res_block_kernel,
        out_shape=jax.ShapeDtypeStruct((H, NWC), x_nchw.dtype),
        in_specs=[vmem_spec] * 5,
        out_specs=vmem_spec,
        compiler_params=pltpu.CompilerParams(
            vmem_limit_bytes=4 * 1024 * 1024,                 # actual footprint ~0.4 MiB
        ),
        cost_estimate=pl.CostEstimate(
            flops=flops, transcendentals=0, bytes_accessed=bytes_accessed),
    )(x_flat, m1, b1_row, m2, b2_row)

    out = out_flat.reshape(H, N, W, C)
    return jnp.transpose(out, (1, 3, 0, 2))                   # back to NCHW


def reference_forward(x_nchw, w1, b1, w2, b2):
    """Pure-JAX reference of the PyTorch Res_Block forward."""
    x = jnp.transpose(x_nchw, (0, 2, 3, 1))

    def conv(z, w, b):
        zp = jnp.pad(z, ((0, 0), (1, 1), (1, 1), (0, 0)), mode="reflect")
        w_hwio = jnp.transpose(w, (2, 3, 1, 0))
        y = jax.lax.conv_general_dilated(
            zp, w_hwio, (1, 1), "VALID",
            dimension_numbers=("NHWC", "HWIO", "NHWC"),
            precision=jax.lax.Precision.HIGHEST)
        return y + b.reshape(1, 1, 1, -1)

    y = conv(x, w1, b1)
    y = jnp.where(y > 0, y, 0.2 * y)
    y = conv(y, w2, b2)
    return jnp.transpose(x + y, (0, 3, 1, 2))


if __name__ == "__main__":
    N, C, H, W = 2, 4, 16, 16
    key = jax.random.PRNGKey(0)
    kx, kw1, kb1, kw2, kb2 = jax.random.split(key, 5)

    x = jax.random.normal(kx, (N, C, H, W), jnp.float32)

    # Deterministic PyTorch-style init: U(-1/sqrt(fan_in), 1/sqrt(fan_in))
    fan_in = C * 3 * 3
    bound = 1.0 / math.sqrt(fan_in)
    w1 = jax.random.uniform(kw1, (C, C, 3, 3), jnp.float32, -bound, bound)
    b1 = jax.random.uniform(kb1, (C,), jnp.float32, -bound, bound)
    w2 = jax.random.uniform(kw2, (C, C, 3, 3), jnp.float32, -bound, bound)
    b2 = jax.random.uniform(kb2, (C,), jnp.float32, -bound, bound)

    out = res_block_forward(x, w1, b1, w2, b2)
    out = jax.block_until_ready(out)

    ref = reference_forward(x, w1, b1, w2, b2)
    assert out.shape == (N, C, H, W)
    # MXU default f32 precision vs HIGHEST reference -> documented 1e-4 tolerance.
    assert bool(jnp.allclose(out, ref, atol=1e-4, rtol=1e-4)), "mismatch vs reference"

    print("KERNEL_OK")
</pallas_src>

<mosaic_0001>
module attributes {stable_mosaic.version = 11 : i64} {
  func.func @res_block_kernel(%arg0: memref<16x128xf32, #tpu.memory_space<vmem>>, %arg1: memref<384x128xf32, #tpu.memory_space<vmem>>, %arg2: memref<1x128xf32, #tpu.memory_space<vmem>>, %arg3: memref<384x128xf32, #tpu.memory_space<vmem>>, %arg4: memref<1x128xf32, #tpu.memory_space<vmem>>, %arg5: memref<16x128xf32, #tpu.memory_space<vmem>>) attributes {dimension_semantics = [], scalar_prefetch = 0 : i64, scratch_operands = 0 : i64, tpu.core_type = #tpu.core_type<tc>} {
    %c0 = arith.constant 0 : index
    %c0_0 = arith.constant 0 : index
    %0 = vector.load %arg0[%c0, %c0_0] : memref<16x128xf32, #tpu.memory_space<vmem>>, vector<16x128xf32>
    %1 = tpu.iota {dimensions = array<i32: 0>} : vector<16x128xi32>
    %c15_i32 = arith.constant 15 : i32
    %2 = tpu.dynamic_rotate %0 by %c15_i32 dim 0 : vector<16x128xf32>, i32 -> vector<16x128xf32>
    %c1_i32 = arith.constant 1 : i32
    %3 = tpu.dynamic_rotate %0 by %c1_i32 dim 0 : vector<16x128xf32>, i32 -> vector<16x128xf32>
    %c0_i32 = arith.constant 0 : i32
    %4 = vector.broadcast %c0_i32 : i32 to vector<16x128xi32>
    %5 = arith.cmpi eq, %1, %4 : vector<16x128xi32>
    %6 = arith.select %5, %2, %3 : vector<16x128xi1>, vector<16x128xf32>
    %c15_i32_1 = arith.constant 15 : i32
    %7 = vector.broadcast %c15_i32_1 : i32 to vector<16x128xi32>
    %8 = arith.cmpi eq, %1, %7 : vector<16x128xi32>
    %9 = arith.select %8, %3, %2 : vector<16x128xi1>, vector<16x128xf32>
    %10 = tpu.concatenate %6, %0, %9 in 1 : vector<16x128xf32>, vector<16x128xf32>, vector<16x128xf32> -> vector<16x384xf32>
    %c0_2 = arith.constant 0 : index
    %c0_3 = arith.constant 0 : index
    %11 = vector.load %arg1[%c0_2, %c0_3] : memref<384x128xf32, #tpu.memory_space<vmem>>, vector<384x128xf32>
    %cst = arith.constant dense<0.000000e+00> : vector<16x128xf32>
    %12 = tpu.matmul %10, %11, %cst {dimension_numbers = #tpu.dot_dimension_numbers<[1], [0], [0], [1], [0, 0, 1, 1], [], []>} : vector<16x384xf32>, vector<384x128xf32>, vector<16x128xf32> -> vector<16x128xf32>
    %c0_4 = arith.constant 0 : index
    %c0_5 = arith.constant 0 : index
    %13 = vector.load %arg2[%c0_4, %c0_5] : memref<1x128xf32, #tpu.memory_space<vmem>>, vector<1x128xf32>
    %14 = vector.broadcast %13 : vector<1x128xf32> to vector<16x128xf32>
    %15 = arith.addf %12, %14 : vector<16x128xf32>
    %cst_6 = arith.constant 2.000000e-01 : f32
    %16 = vector.broadcast %cst_6 : f32 to vector<16x128xf32>
    %17 = arith.mulf %16, %15 : vector<16x128xf32>
    %18 = arith.maximumf %15, %17 : vector<16x128xf32>
    %c15_i32_7 = arith.constant 15 : i32
    %19 = tpu.dynamic_rotate %18 by %c15_i32_7 dim 0 : vector<16x128xf32>, i32 -> vector<16x128xf32>
    %c1_i32_8 = arith.constant 1 : i32
    %20 = tpu.dynamic_rotate %18 by %c1_i32_8 dim 0 : vector<16x128xf32>, i32 -> vector<16x128xf32>
    %c0_i32_9 = arith.constant 0 : i32
    %21 = vector.broadcast %c0_i32_9 : i32 to vector<16x128xi32>
    %22 = arith.cmpi eq, %1, %21 : vector<16x128xi32>
    %23 = arith.select %22, %19, %20 : vector<16x128xi1>, vector<16x128xf32>
    %c15_i32_10 = arith.constant 15 : i32
    %24 = vector.broadcast %c15_i32_10 : i32 to vector<16x128xi32>
    %25 = arith.cmpi eq, %1, %24 : vector<16x128xi32>
    %26 = arith.select %25, %20, %19 : vector<16x128xi1>, vector<16x128xf32>
    %27 = tpu.concatenate %23, %18, %26 in 1 : vector<16x128xf32>, vector<16x128xf32>, vector<16x128xf32> -> vector<16x384xf32>
    %c0_11 = arith.constant 0 : index
    %c0_12 = arith.constant 0 : index
    %28 = vector.load %arg3[%c0_11, %c0_12] : memref<384x128xf32, #tpu.memory_space<vmem>>, vector<384x128xf32>
    %cst_13 = arith.constant dense<0.000000e+00> : vector<16x128xf32>
    %29 = tpu.matmul %27, %28, %cst_13 {dimension_numbers = #tpu.dot_dimension_numbers<[1], [0], [0], [1], [0, 0, 1, 1], [], []>} : vector<16x384xf32>, vector<384x128xf32>, vector<16x128xf32> -> vector<16x128xf32>
    %c0_14 = arith.constant 0 : index
    %c0_15 = arith.constant 0 : index
    %30 = vector.load %arg4[%c0_14, %c0_15] : memref<1x128xf32, #tpu.memory_space<vmem>>, vector<1x128xf32>
    %31 = vector.broadcast %30 : vector<1x128xf32> to vector<16x128xf32>
    %32 = arith.addf %29, %31 : vector<16x128xf32>
    %33 = arith.addf %0, %32 : vector<16x128xf32>
    %c0_16 = arith.constant 0 : index
    %c0_17 = arith.constant 0 : index
    %34 = vector.load %arg5[%c0_16, %c0_17] : memref<16x128xf32, #tpu.memory_space<vmem>>, vector<16x128xf32>
    tpu.vector_store %arg5[%c0_16, %c0_17], %33 {strides = array<i32>} : memref<16x128xf32, #tpu.memory_space<vmem>>, vector<16x128xf32>,
    return
  }
}

</mosaic_0001>

<bundles_post_ra>
// kernel: tpu_custom_call.1
= control target key start
LH: loop header
LB: loop body
LE: loop exit
PB: predicated region body
PF: predicated region fallthrough
CT: control target
= control target key end

     0   :  { %10 = vsyncpa [#allocation3], 0  ;;  %s920_s0 = inlined_call_operand.hbm [shape: f32[16,128], index: 0, kind: input, shape index: {}]   ;;  %s921_s1 = inlined_call_operand.hbm [shape: f32[384,128], index: 1, kind: input, shape index: {}]   ;;  %s922_s2 = inlined_call_operand.vmem [shape: f32[1,128], index: 2, kind: input, shape index: {}]   ;;  %s923_s3 = inlined_call_operand.hbm [shape: f32[384,128], index: 3, kind: input, shape index: {}]   ;;  %s924_s4 = inlined_call_operand.vmem [shape: f32[1,128], index: 4, kind: input, shape index: {}]   ;;  %s925_s5 = inlined_call_operand.hbm [shape: f32[16,128], index: 5, kind: output, shape index: {}]  }
   0x1   :  { %11 = vsyncpa [#allocation6], 0 }
   0x2   :  { %12 = vsyncpa [#allocation4], 0  ;;  %s809_s18 = smov [#allocation5]   ;;  %s810_s20 = smov [#allocation2]  }
   0x3   :  { %s30_s19 = sshll.u32 %s809_s18, 4  ;;  %s18_s21 = sshll.u32 %s810_s20, 4  ;;  %s31_s19 = int_to_ptr.vmem [resolvable:$true] %s30_s19  ;;  %s19_s21 = int_to_ptr.vmem [resolvable:$true] %s18_s21 }
   0x4   :  { %s731_s22 = scalar_lea.vmem %s31_s19, 6144  ;;  %p736_p1 = scmp.lt.s32.totalorder %s31_s19, %s31_s19 }
   0x5   :  { %p732_p0 = scmp.ne.s32.totalorder %s31_s19, %s731_s22  ;;  %p737_p2 = scmp.lt.s32.totalorder %s731_s22, %s731_s22 }
   0x7   :  { %p738_p3 = por %p737_p2, %p736_p1 }
   0x9   :  { %p739_p4 = pnand %p738_p3, %p732_p0 }
   0xb   :  { %742 = shalt.err (!%p739_p4)
}
   0xc   :  { %s811_s23 = smov 128   ;;  %s812_s24 = smov 8  }
   0xd   :  { %36 = dma.hbm_to_vmem [thread:$0]  %s921_s1, 6144, %s31_s19, [#allocation6], %s811_s23, %s811_s23, %s812_s24  }
   0xe   :  { %s751_s27 = scalar_lea.vmem %s19_s21, 256  ;;  %p756_p6 = scmp.lt.s32.totalorder %s19_s21, %s19_s21 }
   0xf   :  { %p752_p5 = scmp.ne.s32.totalorder %s19_s21, %s751_s27  ;;  %p757_p7 = scmp.lt.s32.totalorder %s751_s27, %s751_s27 }
  0x11   :  { %p758_p8 = por %p757_p7, %p756_p6 }
  0x13   :  { %p759_p9 = pnand %p758_p8, %p752_p5 }
  0x15   :  { %762 = shalt.err (!%p759_p9)
}
  0x16   :  { %24 = dma.hbm_to_vmem [thread:$0]  %s920_s0, 256, %s19_s21, [#allocation3], %s811_s23, %s811_s23, %s812_s24  }
  0x17   :  { %s813_s30 = smov [#allocation7]  }
  0x18   :  { %s44_s6 = sshll.u32 %s813_s30, 4  ;;  %s45_s6 = int_to_ptr.vmem [resolvable:$true] %s44_s6 }
  0x19   :  { %s771_s7 = scalar_lea.vmem %s45_s6, 6144  ;;  %p776_p11 = scmp.lt.s32.totalorder %s45_s6, %s45_s6 }
  0x1a   :  { %p772_p10 = scmp.ne.s32.totalorder %s45_s6, %s771_s7  ;;  %p777_p12 = scmp.lt.s32.totalorder %s771_s7, %s771_s7 }
  0x1c   :  { %p778_p13 = por %p777_p12, %p776_p11 }
  0x1e   :  { %p779_p0 = pnand %p778_p13, %p772_p10 }
  0x20   :  { %782 = shalt.err (!%p779_p0)
}
  0x21   :  { %50 = dma.hbm_to_vmem [thread:$0]  %s923_s3, 6144, %s45_s6, [#allocation6], %s811_s23, %s811_s23, %s812_s24  }
  0x22   :  { %803 = dma.done.wait [#allocation3], 256  }
  0x23   :  { %804 = vsyncadd [#allocation3], 4294967040 }
  0x24   :  { %805 = dma.done.wait [#allocation6], 12288  }
  0x25   :  { %806 = vsyncadd [#allocation6], 4294955008  ;;  %v116_v0 = vld [vmem:[#allocation5 + $0xf8] sm:$0xff]  ;;  %v115_v2 = vld [vmem:[#allocation5 + $0xf0] sm:$0xff]  ;;  %v64_v28 = vlaneseq  ;;  %s814_s10 = smov [#allocation8]  }
  0x26   :  { %v100_v1 = vld [vmem:[#allocation5 + $0x78] sm:$0xff]  ;;  %535 = vmatprep.subr.mxu0 %v116_v0  ;;  %v99_v3 = vld [vmem:[#allocation5 + $0x70] sm:$0xff]  ;;  %v114_v5 = vld [vmem:[#allocation5 + $0xe8] sm:$0xff]  ;;  %s520_s11 = sshll.u32 %s814_s10, 4  ;;  %s521_s11 = int_to_ptr.vmem [resolvable:$true] %s520_s11 }
  0x27   :  { %v132_v4 = vld [vmem:[#allocation5 + $0x178] sm:$0xff]  ;;  %536 = vmatpush3.msra.mxu0 %v100_v1  ;;  %v131_v6 = vld [vmem:[#allocation5 + $0x170] sm:$0xff]  ;;  %v98_v7 = vld [vmem:[#allocation5 + $0x68] sm:$0xff]  ;;  %v867_v37 = vshrl.u32 %v64_v28, 7  ;;  %s783_s12 = scalar_lea.vmem %s521_s11, 256  ;;  %p788_p2 = scmp.lt.s32.totalorder %s521_s11, %s521_s11 }
  0x28   :  { %647 = vmatprep.subr.mxu1 %v132_v4  ;;  %537 = vmatprep.subr.mxu0 %v115_v2  ;;  %v130_v8 = vld [vmem:[#allocation5 + $0x168] sm:$0xff]  ;;  %v113_v9 = vld [vmem:[#allocation5 + $0xe0] sm:$0xff]  ;;  %v112_v12 = vld [vmem:[#allocation5 + $0xd8] sm:$0xff]  ;;  %p784_p1 = scmp.ne.s32.totalorder %s521_s11, %s783_s12  ;;  %p789_p3 = scmp.lt.s32.totalorder %s783_s12, %s783_s12 }
  0x29   :  { %648 = vmatpush3.msra.mxu1 %v132_v4  ;;  %538 = vmatpush3.msra.mxu0 %v99_v3  ;;  %v97_v10 = vld [vmem:[#allocation5 + $0x60] sm:$0xff]  ;;  %v96_v13 = vld [vmem:[#allocation5 + $0x58] sm:$0xff]  ;;  %v111_v15 = vld [vmem:[#allocation5 + $0xd0] sm:$0xff]  ;;  %vm69_vm0 = vcmp.lt.s32.totalorder %v867_v37, 7  ;;  %vm74_vm1 = vcmp.lt.s32.totalorder %v867_v37, 1  ;;  %v876_v51 = vadd.s32 8, %v867_v37 }
  0x2a   :  { %649 = vmatprep.subr.mxu1 %v131_v6  ;;  %539 = vmatprep.subr.mxu0 %v114_v5  ;;  %v129_v11 = vld [vmem:[#allocation5 + $0x160] sm:$0xff]  ;;  %v128_v14 = vld [vmem:[#allocation5 + $0x158] sm:$0xff]  ;;  %v95_v16 = vld [vmem:[#allocation5 + $0x50] sm:$0xff]  ;;  %vm77_vm2 = vcmp.eq.s32.totalorder %v867_v37, 0  ;;  %p790_p4 = por %p789_p3, %p788_p2 }
  0x2b   :  { %650 = vmatpush3.msra.mxu1 %v131_v6  ;;  %540 = vmatpush3.msra.mxu0 %v98_v7  ;;  %v127_v17 = vld [vmem:[#allocation5 + $0x150] sm:$0xff]  ;;  %v110_v18 = vld [vmem:[#allocation5 + $0xc8] sm:$0xff]  ;;  %v109_v21 = vld [vmem:[#allocation5 + $0xc0] sm:$0xff]  ;;  %vm82_vm3 = vcmp.eq.s32.totalorder %v876_v51, 15 }
  0x2c   :  { %651 = vmatprep.subr.mxu1 %v130_v8  ;;  %541 = vmatprep.subr.mxu0 %v113_v9  ;;  %v94_v19 = vld [vmem:[#allocation5 + $0x48] sm:$0xff]  ;;  %v93_v22 = vld [vmem:[#allocation5 + $0x40] sm:$0xff]  ;;  %v108_v24 = vld [vmem:[#allocation5 + $0xb8] sm:$0xff]  ;;  %p791_p5 = pnand %p790_p4, %p784_p1 }
  0x2d   :  { %652 = vmatpush3.msra.mxu1 %v130_v8  ;;  %542 = vmatpush3.msra.mxu0 %v97_v10  ;;  %v126_v20 = vld [vmem:[#allocation5 + $0x148] sm:$0xff]  ;;  %v125_v23 = vld [vmem:[#allocation5 + $0x140] sm:$0xff]  ;;  %v92_v25 = vld [vmem:[#allocation5 + $0x38] sm:$0xff] }
  0x2e   :  { %653 = vmatprep.subr.mxu1 %v129_v11  ;;  %543 = vmatprep.subr.mxu0 %v112_v12  ;;  %v124_v26 = vld [vmem:[#allocation5 + $0x138] sm:$0xff]  ;;  %v107_v27 = vld [vmem:[#allocation5 + $0xb0] sm:$0xff]  ;;  %v106_v31 = vld [vmem:[#allocation5 + $0xa8] sm:$0xff] }
  0x2f   :  { %654 = vmatpush3.msra.mxu1 %v129_v11  ;;  %544 = vmatpush3.msra.mxu0 %v96_v13  ;;  %v91_v29 = vld [vmem:[#allocation5 + $0x30] sm:$0xff]  ;;  %v90_v32 = vld [vmem:[#allocation5 + $0x28] sm:$0xff]  ;;  %v105_v34 = vld [vmem:[#allocation5 + $0xa0] sm:$0xff] }
  0x30   :  { %655 = vmatprep.subr.mxu1 %v128_v14  ;;  %545 = vmatprep.subr.mxu0 %v111_v15  ;;  %v123_v30 = vld [vmem:[#allocation5 + $0x130] sm:$0xff]  ;;  %v122_v33 = vld [vmem:[#allocation5 + $0x128] sm:$0xff]  ;;  %v865_v36 = vld [vmem:[#allocation2 + $0x8] sm:$0xff] }
  0x31   :  { %656 = vmatpush3.msra.mxu1 %v128_v14  ;;  %546 = vmatpush3.msra.mxu0 %v95_v16  ;;  %v863_v35 = vld [vmem:[#allocation2] sm:$0xff]  ;;  %v89_v38 = vld [vmem:[#allocation5 + $0x20] sm:$0xff]  ;;  %v104_v40 = vld [vmem:[#allocation5 + $0x98] sm:$0xff]  ;;  %v68_v45 = vrot.slane %v865_v36, 1  ;;  %v73_v46 = vrot.slane %v865_v36, 7 }
  0x32   :  { %657 = vmatprep.subr.mxu1 %v127_v17  ;;  %547 = vmatprep.subr.mxu0 %v110_v18  ;;  %v121_v39 = vld [vmem:[#allocation5 + $0x120] sm:$0xff]  ;;  %v88_v41 = vld [vmem:[#allocation5 + $0x18] sm:$0xff]  ;;  %v67_v43 = vrot.slane %v863_v35, 1  ;;  %v72_v44 = vrot.slane %v863_v35, 7  ;;  %v103_v47 = vld [vmem:[#allocation5 + $0x90] sm:$0xff] }
  0x33   :  { %658 = vmatpush3.msra.mxu1 %v127_v17  ;;  %548 = vmatpush3.msra.mxu0 %v94_v19  ;;  %v120_v42 = vld [vmem:[#allocation5 + $0x118] sm:$0xff]  ;;  %v87_v48 = vld [vmem:[#allocation5 + $0x10] sm:$0xff]  ;;  %v102_v50 = vld [vmem:[#allocation5 + $0x88] sm:$0xff] }
  0x34   :  { %659 = vmatprep.subr.mxu1 %v126_v20  ;;  %549 = vmatprep.subr.mxu0 %v109_v21  ;;  %v119_v49 = vld [vmem:[#allocation5 + $0x110] sm:$0xff]  ;;  %v86_v52 = vld [vmem:[#allocation5 + $0x8] sm:$0xff]  ;;  %v70_v53 = vsel %vm69_vm0, %v67_v43, %v68_v45  ;;  %v76_v54 = vsel %vm74_vm1, %v73_v46, %v72_v44  ;;  %v101_v55 = vld [vmem:[#allocation5 + $0x80] sm:$0xff]  ;;  %v75_v60 = vsel %vm74_vm1, %v72_v44, %v73_v46 }
  0x35   :  { %660 = vmatpush3.msra.mxu1 %v126_v20  ;;  %550 = vmatpush3.msra.mxu0 %v93_v22  ;;  %v118_v56 = vld [vmem:[#allocation5 + $0x108] sm:$0xff]  ;;  %v85_v57 = vld [vmem:[#allocation5] sm:$0xff]  ;;  %v79_v58 = vsel %vm77_vm2, %v70_v53, %v76_v54  ;;  %v71_v61 = vsel %vm69_vm0, %v68_v45, %v67_v43  ;;  %v337_v62 = vld [vmem:[#allocation7 + $0xf8] sm:$0xff] }
  0x36   :  { %661 = vmatprep.subr.mxu1 %v125_v23  ;;  %551 = vmatprep.subr.mxu0 %v108_v24  ;;  %v117_v59 = vld [vmem:[#allocation5 + $0x100] sm:$0xff]  ;;  %v84_v63 = vsel %vm82_vm3, %v75_v60, %v71_v61  ;;  %v353_v0 = vld [vmem:[#allocation7 + $0x178] sm:$0xff]  ;;  %v352_v2 = vld [vmem:[#allocation7 + $0x170] sm:$0xff] }
  0x37   :  { %662 = vmatpush3.msra.mxu1 %v125_v23  ;;  %552 = vmatpush3.msra.mxu0 %v92_v25  ;;  %v321_v1 = vld [vmem:[#allocation7 + $0x78] sm:$0xff]  ;;  %v336_v3 = vld [vmem:[#allocation7 + $0xf0] sm:$0xff]  ;;  %v351_v5 = vld [vmem:[#allocation7 + $0x168] sm:$0xff] }
  0x38   :  { %663 = vmatprep.subr.mxu1 %v124_v26  ;;  %553 = vmatprep.subr.mxu0 %v107_v27  ;;  %v320_v4 = vld [vmem:[#allocation7 + $0x70] sm:$0xff]  ;;  %v335_v6 = vld [vmem:[#allocation7 + $0xe8] sm:$0xff]  ;;  %v350_v8 = vld [vmem:[#allocation7 + $0x160] sm:$0xff] }
  0x39   :  { %664 = vmatpush3.msra.mxu1 %v124_v26  ;;  %554 = vmatpush3.msra.mxu0 %v91_v29  ;;  %v319_v7 = vld [vmem:[#allocation7 + $0x68] sm:$0xff]  ;;  %v334_v9 = vld [vmem:[#allocation7 + $0xe0] sm:$0xff]  ;;  %v349_v11 = vld [vmem:[#allocation7 + $0x158] sm:$0xff] }
  0x3a   :  { %665 = vmatprep.subr.mxu1 %v123_v30  ;;  %555 = vmatprep.subr.mxu0 %v106_v31  ;;  %v318_v10 = vld [vmem:[#allocation7 + $0x60] sm:$0xff]  ;;  %v333_v12 = vld [vmem:[#allocation7 + $0xd8] sm:$0xff]  ;;  %v348_v14 = vld [vmem:[#allocation7 + $0x150] sm:$0xff] }
  0x3b   :  { %666 = vmatpush3.msra.mxu1 %v123_v30  ;;  %556 = vmatpush3.msra.mxu0 %v90_v32  ;;  %v317_v13 = vld [vmem:[#allocation7 + $0x58] sm:$0xff]  ;;  %v332_v15 = vld [vmem:[#allocation7 + $0xd0] sm:$0xff]  ;;  %v331_v17 = vld [vmem:[#allocation7 + $0xc8] sm:$0xff] }
  0x3c   :  { %667 = vmatprep.subr.mxu1 %v122_v33  ;;  %557 = vmatprep.subr.mxu0 %v105_v34  ;;  %v316_v16 = vld [vmem:[#allocation7 + $0x50] sm:$0xff]  ;;  %v347_v18 = vld [vmem:[#allocation7 + $0x148] sm:$0xff]  ;;  %v330_v20 = vld [vmem:[#allocation7 + $0xc0] sm:$0xff] }
  0x3d   :  { %668 = vmatpush3.msra.mxu1 %v122_v33  ;;  %558 = vmatpush3.msra.mxu0 %v89_v38  ;;  %v315_v19 = vld [vmem:[#allocation7 + $0x48] sm:$0xff]  ;;  %v346_v21 = vld [vmem:[#allocation7 + $0x140] sm:$0xff]  ;;  %v329_v23 = vld [vmem:[#allocation7 + $0xb8] sm:$0xff] }
  0x3e   :  { %669 = vmatprep.subr.mxu1 %v121_v39  ;;  %559 = vmatprep.subr.mxu0 %v104_v40  ;;  %v314_v22 = vld [vmem:[#allocation7 + $0x40] sm:$0xff]  ;;  %v345_v24 = vld [vmem:[#allocation7 + $0x138] sm:$0xff]  ;;  %v328_v26 = vld [vmem:[#allocation7 + $0xb0] sm:$0xff] }
  0x3f   :  { %670 = vmatpush3.msra.mxu1 %v121_v39  ;;  %560 = vmatpush3.msra.mxu0 %v88_v41  ;;  %v313_v25 = vld [vmem:[#allocation7 + $0x38] sm:$0xff]  ;;  %v344_v27 = vld [vmem:[#allocation7 + $0x130] sm:$0xff]  ;;  %v327_v29 = vld [vmem:[#allocation7 + $0xa8] sm:$0xff] }
  0x40   :  { %671 = vmatprep.subr.mxu1 %v120_v42  ;;  %561 = vmatprep.subr.mxu0 %v103_v47  ;;  %v312_v28 = vld [vmem:[#allocation7 + $0x30] sm:$0xff]  ;;  %v343_v30 = vld [vmem:[#allocation7 + $0x128] sm:$0xff]  ;;  %v326_v32 = vld [vmem:[#allocation7 + $0xa0] sm:$0xff] }
  0x41   :  { %672 = vmatpush3.msra.mxu1 %v120_v42  ;;  %562 = vmatpush3.msra.mxu0 %v87_v48  ;;  %v311_v31 = vld [vmem:[#allocation7 + $0x28] sm:$0xff]  ;;  %v342_v33 = vld [vmem:[#allocation7 + $0x120] sm:$0xff]  ;;  %v325_v38 = vld [vmem:[#allocation7 + $0x98] sm:$0xff] }
  0x42   :  { %673 = vmatprep.subr.mxu1 %v119_v49  ;;  %563 = vmatprep.subr.mxu0 %v102_v50  ;;  %v310_v34 = vld [vmem:[#allocation7 + $0x20] sm:$0xff]  ;;  %v341_v39 = vld [vmem:[#allocation7 + $0x118] sm:$0xff]  ;;  %v324_v41 = vld [vmem:[#allocation7 + $0x90] sm:$0xff] }
  0x43   :  { %204 = vmatprep.mubr.f32.mxu0 %v863_v35  ;;  %564 = vmatpush3.msra.mxu0 %v86_v52  ;;  %v309_v40 = vld [vmem:[#allocation7 + $0x18] sm:$0xff]  ;;  %v340_v42 = vld [vmem:[#allocation7 + $0x110] sm:$0xff]  ;;  %v323_v44 = vld [vmem:[#allocation7 + $0x88] sm:$0xff] }
  0x44   :  { %674 = vmatpush3.msra.mxu1 %v119_v49  ;;  %565 = vmatprep.subr.mxu0 %v101_v55  ;;  %v308_v43 = vld [vmem:[#allocation7 + $0x10] sm:$0xff]  ;;  %v339_v45 = vld [vmem:[#allocation7 + $0x108] sm:$0xff]  ;;  %v322_v47 = vld [vmem:[#allocation7 + $0x80] sm:$0xff] }
  0x45   :  { %675 = vmatprep.subr.mxu1 %v118_v56  ;;  %566 = vmatpush3.msra.mxu0 %v85_v57  ;;  %v307_v46 = vld [vmem:[#allocation7 + $0x8] sm:$0xff]  ;;  %v338_v48 = vld [vmem:[#allocation7 + $0x100] sm:$0xff] }
  0x46   :  { %676 = vmatpush3.msra.mxu1 %v118_v56  ;;  %205 = vmatmul.mubr.f32.vlgmr.msra.gmra.mxu0 %v79_v58  ;;  %v306_v49 = vld [vmem:[#allocation7] sm:$0xff] }
  0x47   :  { %677 = vmatprep.subr.mxu1 %v117_v59  ;;  %209 = vmatprep.mubr.f32.mxu0 %v865_v36 }
  0x48   :  { %678 = vmatpush3.msra.mxu1 %v117_v59  ;;  %679 = vmatprep.mubr.f32.mxu1 %v70_v53  ;;  %v533_v53 = vld [vmem:[%s922_s2] ss:$0 sm:$0xff] }
  0x49   :  { %591 = vmatprep.subr.mxu0 %v337_v62  ;;  %680 = vmatmul.mubr.f32.vlgmr.msra.gmra.mxu1 %v84_v63 }
  0x4a   :  { %682 = vmatprep.subr.mxu1 %v353_v0  ;;  %210 = vmatmul.mubr.f32.gmra.mxu0 %v75_v60 }
  0x4b   :  { %683 = vmatpush3.msra.mxu1 %v353_v0  ;;  %592 = vmatpush3.msra.mxu0 %v321_v1 }
  0x4c   :  { %684 = vmatprep.subr.mxu1 %v352_v2  ;;  %593 = vmatprep.subr.mxu0 %v336_v3 }
  0x4d   :  { %685 = vmatpush3.msra.mxu1 %v352_v2  ;;  %594 = vmatpush3.msra.mxu0 %v320_v4 }
  0x4e   :  { %686 = vmatprep.subr.mxu1 %v351_v5  ;;  %595 = vmatprep.subr.mxu0 %v335_v6 }
  0x4f   :  { %687 = vmatpush3.msra.mxu1 %v351_v5  ;;  %596 = vmatpush3.msra.mxu0 %v319_v7 }
  0x50   :  { %688 = vmatprep.subr.mxu1 %v350_v8  ;;  %597 = vmatprep.subr.mxu0 %v334_v9 }
  0x51   :  { %689 = vmatpush3.msra.mxu1 %v350_v8  ;;  %598 = vmatpush3.msra.mxu0 %v318_v10 }
  0x52   :  { %690 = vmatprep.subr.mxu1 %v349_v11  ;;  %599 = vmatprep.subr.mxu0 %v333_v12 }
  0x53   :  { %691 = vmatpush3.msra.mxu1 %v349_v11  ;;  %600 = vmatpush3.msra.mxu0 %v317_v13 }
  0x54   :  { %692 = vmatprep.subr.mxu1 %v348_v14  ;;  %601 = vmatprep.subr.mxu0 %v332_v15 }
  0x55   :  { %693 = vmatpush3.msra.mxu1 %v348_v14  ;;  %602 = vmatpush3.msra.mxu0 %v316_v16 }
  0x56   :  { %603 = vmatprep.subr.mxu0 %v331_v17  ;;  %694 = vmatprep.subr.mxu1 %v347_v18  ;;  %v534_v17 = vld [vmem:[%s924_s4] ss:$0 sm:$0xff] }
  0x57   :  { %604 = vmatpush3.msra.mxu0 %v315_v19  ;;  %695 = vmatpush3.msra.mxu1 %v347_v18 }
  0x58   :  { %605 = vmatprep.subr.mxu0 %v330_v20  ;;  %696 = vmatprep.subr.mxu1 %v346_v21 }
  0x59   :  { %606 = vmatpush3.msra.mxu0 %v314_v22  ;;  %697 = vmatpush3.msra.mxu1 %v346_v21 }
  0x5a   :  { %607 = vmatprep.subr.mxu0 %v329_v23  ;;  %698 = vmatprep.subr.mxu1 %v345_v24 }
  0x5b   :  { %608 = vmatpush3.msra.mxu0 %v313_v25  ;;  %699 = vmatpush3.msra.mxu1 %v345_v24 }
  0x5c   :  { %609 = vmatprep.subr.mxu0 %v328_v26  ;;  %700 = vmatprep.subr.mxu1 %v344_v27 }
  0x5d   :  { %610 = vmatpush3.msra.mxu0 %v312_v28  ;;  %701 = vmatpush3.msra.mxu1 %v344_v27 }
  0x5e   :  { %611 = vmatprep.subr.mxu0 %v327_v29  ;;  %702 = vmatprep.subr.mxu1 %v343_v30 }
  0x5f   :  { %612 = vmatpush3.msra.mxu0 %v311_v31  ;;  %703 = vmatpush3.msra.mxu1 %v343_v30 }
  0x60   :  { %613 = vmatprep.subr.mxu0 %v326_v32  ;;  %704 = vmatprep.subr.mxu1 %v342_v33 }
  0x61   :  { %614 = vmatpush3.msra.mxu0 %v310_v34  ;;  %705 = vmatpush3.msra.mxu1 %v342_v33 }
  0x62   :  { %615 = vmatprep.subr.mxu0 %v325_v38  ;;  %706 = vmatprep.subr.mxu1 %v341_v39 }
  0x63   :  { %616 = vmatpush3.msra.mxu0 %v309_v40  ;;  %707 = vmatpush3.msra.mxu1 %v341_v39 }
  0x64   :  { %617 = vmatprep.subr.mxu0 %v324_v41  ;;  %708 = vmatprep.subr.mxu1 %v340_v42 }
  0x65   :  { %618 = vmatpush3.msra.mxu0 %v308_v43  ;;  %709 = vmatpush3.msra.mxu1 %v340_v42 }
  0x66   :  { %619 = vmatprep.subr.mxu0 %v323_v44  ;;  %710 = vmatprep.subr.mxu1 %v339_v45 }
  0x67   :  { %620 = vmatpush3.msra.mxu0 %v307_v46  ;;  %711 = vmatpush3.msra.mxu1 %v339_v45 }
  0x68   :  { %621 = vmatprep.subr.mxu0 %v322_v47  ;;  %712 = vmatprep.subr.mxu1 %v338_v48 }
  0x69   :  { %622 = vmatpush3.msra.mxu0 %v306_v49  ;;  %713 = vmatpush3.msra.mxu1 %v338_v48 }
 0x106   :  { %v567_v50 = vpop.f32.mrf.mxu0 }
 0x108   :  { %v568_v52 = vpop.f32.mrf.mxu0 }
 0x109   :  { %v569_v54 = vadd.f32 %v568_v52, %v567_v50  ;;  %v681_v55 = vpop.f32.mrf.mxu1 }
 0x10a   :  { %v570_v56 = vpop.f32.mrf.mxu0 }
 0x10b   :  { %v207_v57 = vadd.f32 %v569_v54, %v533_v53  ;;  %v281_v58 = vpop.f32.mrf.mxu1 }
 0x10c   :  { %v571_v59 = vpop.f32.mrf.mxu0 }
 0x10d   :  { %v572_v60 = vadd.f32 %v571_v59, %v570_v56  ;;  %v282_v61 = vadd.f32 %v281_v58, %v207_v57 }
 0x10f   :  { %v212_v62 = vadd.f32 %v572_v60, %v533_v53  ;;  %v290_v63 = vmul.f32 0.2, %v282_v61 }
 0x111   :  { %v287_v0 = vadd.f32 %v681_v55, %v212_v62  ;;  %v292_v1 = vmax.f32 %v282_v61, %v290_v63 }
 0x113   :  { %v291_v2 = vmul.f32 0.2, %v287_v0  ;;  %425 = vmatprep.mubr.f32.mxu0 %v292_v1  ;;  %v298_v4 = vrot.slane %v292_v1, 7  ;;  %v294_v5 = vrot.slane %v292_v1, 1 }
 0x115   :  { %v293_v3 = vmax.f32 %v287_v0, %v291_v2 }
 0x117   :  { %v295_v6 = vrot.slane %v293_v3, 1  ;;  %v299_v7 = vrot.slane %v293_v3, 7 }
 0x119   :  { %v296_v8 = vsel %vm69_vm0, %v294_v5, %v295_v6  ;;  %v301_v9 = vsel %vm74_vm1, %v299_v7, %v298_v4  ;;  %v297_v10 = vsel %vm69_vm0, %v295_v6, %v294_v5  ;;  %v300_v11 = vsel %vm74_vm1, %v298_v4, %v299_v7 }
 0x11a   :  { %v302_v12 = vsel %vm77_vm2, %v296_v8, %v301_v9  ;;  %714 = vmatprep.mubr.f32.mxu1 %v296_v8  ;;  %v305_v13 = vsel %vm82_vm3, %v300_v11, %v297_v10 }
 0x11b   :  { %426 = vmatmul.mubr.f32.vlgmr.msra.gmra.mxu0 %v302_v12  ;;  %715 = vmatmul.mubr.f32.vlgmr.msra.gmra.mxu1 %v305_v13 }
 0x11c   :  { %430 = vmatprep.mubr.f32.mxu0 %v293_v3 }
 0x11f   :  { %431 = vmatmul.mubr.f32.gmra.mxu0 %v300_v11 }
 0x1db   :  { %v623_v14 = vpop.f32.mrf.mxu0  ;;  %v716_v15 = vpop.f32.mrf.mxu1 }
 0x1dd   :  { %v624_v16 = vpop.f32.mrf.mxu0  ;;  %v502_v37 = vpop.f32.mrf.mxu1 }
 0x1de   :  { %v625_v18 = vadd.f32 %v624_v16, %v623_v14 }
 0x1df   :  { %v626_v19 = vpop.f32.mrf.mxu0 }
 0x1e0   :  { %v428_v20 = vadd.f32 %v625_v18, %v534_v17 }
 0x1e1   :  { %v627_v21 = vpop.f32.mrf.mxu0 }
 0x1e2   :  { %v503_v22 = vadd.f32 %v502_v37, %v428_v20  ;;  %v628_v23 = vadd.f32 %v627_v21, %v626_v19 }
 0x1e4   :  { %v511_v51 = vadd.f32 %v503_v22, %v863_v35  ;;  %v433_v24 = vadd.f32 %v628_v23, %v534_v17 }
 0x1e6   :  { %513 = vst [vmem:[#allocation8] sm:$0xff] %v511_v51  ;;  %v508_v25 = vadd.f32 %v716_v15, %v433_v24 }
 0x1e8   :  { %v512_v26 = vadd.f32 %v508_v25, %v865_v36 }
 0x1ea   :  { %514 = vst [vmem:[#allocation8 + $0x8] sm:$0xff] %v512_v26 }
 0x1eb   :  { %794 = shalt.err (!%p791_p5)
}
 0x1ec   :  { %526 = dma.vmem_to_hbm [thread:$0]  %s521_s11, 256, %s925_s5, [#allocation4], %s811_s23, %s811_s23, %s812_s24  }
 0x1ed   :  { %807 = dma.done.wait [#allocation4], 256  }
 0x1ee   :  { %808 = vsyncadd [#allocation4], 4294967040 }
 0x1ef   :  { %530 = vsyncpa [#allocation3], 1 }
 0x1f0   :  { %531 = vsyncpa [#allocation6], 1 }
 0x1f1   :  { %532 = vsyncpa [#allocation4], 1 }

</bundles_post_ra>
